<compile_context>
chip_gen: v5e
topology: v5e:2x2
jax: 0.10.0
libtpu: 0.0.40
codegen_flags: <defaults>
</compile_context>

<pallas_src>
import functools
import math

import jax
import jax.numpy as jnp
from jax.experimental import pallas as pl
from jax.experimental.pallas import tpu as pltpu


def _embedding_gather_kernel(ids_ref, table_hbm, out_ref, row_buf, copy_sems,
                             *, sqrt_dim, block_tokens):
    # ids_ref:   (N_pad,) int32, SMEM (scalar prefetch) -- flattened token ids
    # table_hbm: (V, D) float32 ref left in HBM (memory_space=pl.ANY)
    # out_ref:   (block_tokens, D) float32 VMEM output block
    # row_buf:   (block_tokens, D) float32 VMEM gather scratch
    # copy_sems: (block_tokens,) DMA semaphores
    base = pl.program_id(0) * block_tokens

    # Issue one row-gather DMA per token in this block (HBM -> VMEM).
    @pl.loop(0, block_tokens)
    def _start(t):
        row = ids_ref[base + t]
        pltpu.make_async_copy(
            table_hbm.at[pl.ds(row, 1)],
            row_buf.at[pl.ds(t, 1)],
            copy_sems.at[t],
        ).start()

    # Wait for all row copies of this block.
    @pl.loop(0, block_tokens)
    def _wait(t):
        pltpu.make_async_copy(
            table_hbm.at[pl.ds(0, 1)],
            row_buf.at[pl.ds(t, 1)],
            copy_sems.at[t],
        ).wait()

    # Fused sqrt(d_model) scale; lane-dense (block_tokens, D) store.
    out_ref[...] = (row_buf[...] * sqrt_dim).astype(out_ref.dtype)


def embedding_forward(token_ids, table, *, block_tokens=8):
    """token_ids: int array of shape (..., ); table: (V, D) float32.

    Returns token_ids.shape + (D,) float32, = table[token_ids] * sqrt(D).
    For production workloads raise block_tokens to 128-256.
    """
    ids_shape = token_ids.shape
    V, D = table.shape
    N = math.prod(ids_shape)
    n_blocks = pl.cdiv(N, block_tokens)
    N_pad = n_blocks * block_tokens
    sqrt_dim = math.sqrt(D)

    ids_flat = token_ids.reshape(N).astype(jnp.int32)
    # Clamp ids so the gather DMA can never go out of bounds
    # (torch.nn.Embedding would raise on OOB ids instead).
    ids_flat = jnp.clip(ids_flat, 0, V - 1)
    if N_pad != N:
        # Padding tokens gather row 0; their outputs are sliced off below.
        ids_flat = jnp.pad(ids_flat, (0, N_pad - N))

    kernel = functools.partial(
        _embedding_gather_kernel, sqrt_dim=sqrt_dim, block_tokens=block_tokens)

    out_flat = pl.pallas_call(
        kernel,
        out_shape=jax.ShapeDtypeStruct((N_pad, D), table.dtype),
        grid_spec=pltpu.PrefetchScalarGridSpec(
            num_scalar_prefetch=1,                       # ids -> SMEM
            grid=(n_blocks,),
            in_specs=[
                pl.BlockSpec(memory_space=pl.ANY),       # table stays in HBM
            ],
            out_specs=pl.BlockSpec((block_tokens, D), lambda i, ids: (i, 0)),
            scratch_shapes=[
                pltpu.VMEM((block_tokens, D), table.dtype),   # gather buffer
                pltpu.SemaphoreType.DMA((block_tokens,)),     # per-row sems
            ],
        ),
        compiler_params=pltpu.CompilerParams(
            dimension_semantics=("parallel",)),
    )(ids_flat, table)

    return out_flat[:N].reshape(*ids_shape, D)


def make_embedding_table(key, num_embeddings, d_model, pad_id):
    # Deterministic init matching nn.Embedding(num_embeddings, d_model,
    # padding_idx=pad_id): normal(0, 1) weights with the pad row zeroed.
    # TODO(synk): padding row is zeroed at init only (forward-pass semantics);
    # gradient masking for padding_idx is a training-time concern.
    table = jax.random.normal(key, (num_embeddings, d_model), dtype=jnp.float32)
    table = table.at[pad_id].set(0.0)
    return table


if __name__ == "__main__":
    key = jax.random.PRNGKey(0)
    k_tab, k_ids = jax.random.split(key)

    num_embeddings = 32   # vocab size
    pad_id = 0
    d_model = 128         # lane-aligned small hidden size
    batch, seq = 2, 8

    table = make_embedding_table(k_tab, num_embeddings, d_model, pad_id)
    token_ids = jax.random.randint(k_ids, (batch, seq), 0, num_embeddings,
                                   dtype=jnp.int32)

    out = embedding_forward(token_ids, table, block_tokens=8)
    out = jax.block_until_ready(out)

    # Reference check (plain JAX gather * sqrt(d_model)).
    ref = table[token_ids] * math.sqrt(d_model)
    assert out.shape == (batch, seq, d_model)
    assert jnp.allclose(out, ref, atol=1e-5, rtol=1e-5)

    print("KERNEL_OK")
</pallas_src>

<mosaic_0001>
module attributes {stable_mosaic.version = 11 : i64} {
  func.func @_embedding_gather_kernel(%arg0: i32, %arg1: memref<16xi32, #tpu.memory_space<smem>>, %arg2: memref<32x128xf32, #tpu.memory_space<any>>, %arg3: memref<8x128xf32, #tpu.memory_space<vmem>>, %arg4: memref<8x128xf32, #tpu.memory_space<vmem>>, %arg5: memref<8x!tpu.dma_semaphore, #tpu.memory_space<semaphore_mem>>) attributes {dimension_semantics = [#tpu.dimension_semantics<parallel>], iteration_bounds = array<i64: 2>, scalar_prefetch = 1 : i64, scratch_operands = 2 : i64, tpu.core_type = #tpu.core_type<tc>, window_params = [{}, {transform_indices = @transform_1, window_bounds = array<i64: 8, 128>}]} {
    %c8_i32 = arith.constant 8 : i32
    %0 = arith.muli %arg0, %c8_i32 : i32
    %c0_i32 = arith.constant 0 : i32
    %c8_i32_0 = arith.constant 8 : i32
    %1 = arith.addi %c0_i32, %c8_i32_0 : i32
    %c1_i32 = arith.constant 1 : i32
    scf.for %arg6 = %c0_i32 to %1 step %c1_i32  : i32 {
      %c1_i32_9 = arith.constant 1 : i32
      %7 = arith.muli %arg6, %c1_i32_9 : i32
      %c0_i32_10 = arith.constant 0 : i32
      %8 = arith.addi %c0_i32_10, %7 : i32
      %9 = arith.addi %0, %8 : i32
      %10 = arith.index_cast %9 : i32 to index
      %11 = memref.load %arg1[%10] : memref<16xi32, #tpu.memory_space<smem>>
      %c0_i32_11 = arith.constant 0 : i32
      %12 = tpu.memref_slice %arg2[%11, %c0_i32_11] : memref<32x128xf32, #tpu.memory_space<any>> -> memref<1x128xf32, #tpu.memory_space<any>>
      %c0_i32_12 = arith.constant 0 : i32
      %13 = tpu.memref_slice %arg4[%8, %c0_i32_12] : memref<8x128xf32, #tpu.memory_space<vmem>> -> memref<1x128xf32, #tpu.memory_space<vmem>>
      %14 = tpu.memref_slice %arg5[%8] : memref<8x!tpu.dma_semaphore, #tpu.memory_space<semaphore_mem>> -> memref<1x!tpu.dma_semaphore, #tpu.memory_space<semaphore_mem>>
      %15 = tpu.memref_squeeze %14 : memref<1x!tpu.dma_semaphore, #tpu.memory_space<semaphore_mem>> -> memref<!tpu.dma_semaphore, #tpu.memory_space<semaphore_mem>>
      tpu.enqueue_dma source(%12 : memref<1x128xf32, #tpu.memory_space<any>>) target(%13 : memref<1x128xf32, #tpu.memory_space<vmem>>) target_semaphore(%15 : memref<!tpu.dma_semaphore, #tpu.memory_space<semaphore_mem>>)
    }
    %c8_i32_1 = arith.constant 8 : i32
    %c0_i32_2 = arith.constant 0 : i32
    %c8_i32_3 = arith.constant 8 : i32
    %2 = arith.addi %c0_i32_2, %c8_i32_3 : i32
    %c1_i32_4 = arith.constant 1 : i32
    scf.for %arg6 = %c0_i32_2 to %2 step %c1_i32_4  : i32 {
      %c1_i32_9 = arith.constant 1 : i32
      %7 = arith.muli %arg6, %c1_i32_9 : i32
      %c0_i32_10 = arith.constant 0 : i32
      %8 = arith.addi %c0_i32_10, %7 : i32
      %c0_i32_11 = arith.constant 0 : i32
      %c0_i32_12 = arith.constant 0 : i32
      %9 = tpu.memref_slice %arg2[%c0_i32_11, %c0_i32_12] : memref<32x128xf32, #tpu.memory_space<any>> -> memref<1x128xf32, #tpu.memory_space<any>>
      %c0_i32_13 = arith.constant 0 : i32
      %10 = tpu.memref_slice %arg4[%8, %c0_i32_13] : memref<8x128xf32, #tpu.memory_space<vmem>> -> memref<1x128xf32, #tpu.memory_space<vmem>>
      %11 = tpu.memref_slice %arg5[%8] : memref<8x!tpu.dma_semaphore, #tpu.memory_space<semaphore_mem>> -> memref<1x!tpu.dma_semaphore, #tpu.memory_space<semaphore_mem>>
      %12 = tpu.memref_squeeze %11 : memref<1x!tpu.dma_semaphore, #tpu.memory_space<semaphore_mem>> -> memref<!tpu.dma_semaphore, #tpu.memory_space<semaphore_mem>>
      tpu.wait_dma2 semaphore(%12 : memref<!tpu.dma_semaphore, #tpu.memory_space<semaphore_mem>>) src(%9 : memref<1x128xf32, #tpu.memory_space<any>>) dst(%10 : memref<1x128xf32, #tpu.memory_space<vmem>>)
    }
    %c8_i32_5 = arith.constant 8 : i32
    %c0 = arith.constant 0 : index
    %c0_6 = arith.constant 0 : index
    %3 = vector.load %arg4[%c0, %c0_6] : memref<8x128xf32, #tpu.memory_space<vmem>>, vector<8x128xf32>
    %cst = arith.constant 11.3137083 : f32
    %4 = vector.broadcast %cst : f32 to vector<8x128xf32>
    %5 = arith.mulf %3, %4 : vector<8x128xf32>
    %c0_7 = arith.constant 0 : index
    %c0_8 = arith.constant 0 : index
    %6 = vector.load %arg3[%c0_7, %c0_8] : memref<8x128xf32, #tpu.memory_space<vmem>>, vector<8x128xf32>
    tpu.vector_store %arg3[%c0_7, %c0_8], %5 {strides = array<i32>} : memref<8x128xf32, #tpu.memory_space<vmem>>, vector<8x128xf32>,
    return
  }
  func.func @transform_1(%arg0: i32, %arg1: memref<16xi32, #tpu.memory_space<smem>>) -> (i32, i32) {
    %c0_i32 = arith.constant 0 : i32
    %c0_i32_0 = arith.constant 0 : i32
    return %arg0, %c0_i32 : i32, i32
  }
}

</mosaic_0001>

<bundles_post_ra>
// kernel: tpu_custom_call.1
= control target key start
LH: loop header
LB: loop body
LE: loop exit
PB: predicated region body
PF: predicated region fallthrough
CT: control target
= control target key end

     0   :  { %s399_s12 = smov [#allocation5]   ;;  %s523_s0 = inlined_call_operand.hbm [shape: s32[16], index: 0, kind: input, shape index: {}]   ;;  %s524_s1 = inlined_call_operand.hbm [shape: f32[32,128], index: 1, kind: input, shape index: {}]   ;;  %s525_s2 = inlined_call_operand.hbm [shape: f32[16,128], index: 2, kind: output, shape index: {}]  }
   0x1   :  { %s8_s11 = sshll.u32 %s523_s0, 4  ;;  %s9_s11 = int_to_ptr.hbm [resolvable:$true] %s8_s11 }
   0x2   :  { %11 = dma.hbm_to_smem %s9_s11, 16, %s399_s12, [#allocation4] }
   0x3   :  { %371 = dma.done.wait [#allocation4], 16 }
   0x4   :  { %372 = vsyncadd [#allocation4], 4294967280 }
   0x5   :  { %14 = sfence }
   0x6   :  { %15 = vsyncpa [#allocation7], 0 }
   0x7   :  { %17 = vsyncpa [#allocation7 + $0x1], 0  ;;  %s419_s13 = smov 0   ;;  %s421_s14 = smov 0  }
   0x8   :  { %s423_s15 = smov 0  }
   0x9 LB: > { %s222_s0 = sadd.s32 4294967295, %s389_s15   ;;  %s436_s16 = sadd.s32 1, %s389_s15   ;;  %s389_s15 = sphi %s423_s15, %s530_s15   ;;  %s385_s14 = sphi %s421_s14, %s529_s14   ;;  %s381_s13 = sphi %s419_s13, %s528_s13  }
   0xa   : > { %s26_s17 = ssub.s32 %s389_s15, %s436_s16  ;;  %s29_s18 = sadd.s32 1, %s385_s14 }
   0xb   : > { %p27_p0 = scmp.eq.s32.totalorder %s26_s17, 0  ;;  %p223_p1 = scmp.ne.s32.totalorder %s26_s17, 0 }
   0xc   : > { %p33_p2 = scmp.eq.s32.totalorder %s389_s15, 1  ;;  %p38_p3 = scmp.ne.s32.totalorder %s385_s14, %s381_s13 }
   0xd   : > { %s445_s19 = scalar_select %p27_p0, %s385_s14, %s29_s18  }
   0xe   : > { %p447_p4 = por %p223_p1, %p33_p2  ;;  %p39_p5 = scmp.eq.s32.totalorder %s222_s0, 1 }
   0xf   : > { %p224_p7 = scmp.ge.s32.totalorder %s389_s15, 2 }
  0x10   : > { %p451_p6 = por %p39_p5, %p38_p3  ;;  %s53_s22 = sand.u32 (!%p224_p7), 1, %s385_s14  }
  0x11   : > { %48 = sbr.rel (%p224_p7) target bundleno = 77 (0x4d), region = 12  ;;  %s226_s23 = sshll.u32 (!%p224_p7), %s389_s15, 3 }
  0x12   : > { %s460_s24 = sshll.u32 (!%p224_p7), %s53_s22, 3  ;;  %s463_s26 = smov (!%p224_p7), 0  }
  0x13   : > { %s55_s25 = scalar_lea.vmem (!%p224_p7), [#allocation6], %s460_s24 }
  0x16 LB: >> { %s63_s27 = sadd.s32 %s393_s26, %s226_s23  ;;  %s66_s29 = scalar_lea.vmem [#allocation2], %s393_s26  ;;  %s393_s26 = sphi %s463_s26, %s62_s26  }
  0x17   : >> { %s64_s28 = sld [smem:[#allocation5 + %s63_s27]]  ;;  %s472_s30 = sshll.u32 %s66_s29, 4  ;;  %s78_s30 = int_to_ptr.vmem [resolvable:$true] %s472_s30 }
  0x18   : >> { %s67_s7 = scalar_lea.sflag [#allocation3], %s393_s26  ;;  %s303_s12 = scalar_lea.hbm %s524_s1, 32 }
  0x1d   : >> { %s65_s5 = scalar_lea.hbm %s524_s1, %s64_s28 }
  0x1e   : >> { %s75_s6 = sshll.u32 %s65_s5, 4  ;;  %s76_s6 = int_to_ptr.hbm [resolvable:$true] %s75_s6 }
  0x1f   : >> { %s299_s8 = sshra.s32 %s76_s6, 4  ;;  %s300_s8 = int_to_ptr.hbm [resolvable:$true] %s299_s8 }
  0x20   : >> { %s301_s9 = scalar_lea.hbm %s300_s8, 1  ;;  %p304_p9 = scmp.lt.s32.totalorder %s300_s8, %s524_s1 }
  0x21   : >> { %p302_p8 = scmp.ne.s32.totalorder %s300_s8, %s301_s9  ;;  %p305_p10 = scmp.lt.s32.totalorder %s303_s12, %s301_s9 }
  0x23   : >> { %p306_p11 = por %p305_p10, %p304_p9 }
  0x25   : >> { %p307_p12 = pnand %p306_p11, %p302_p8 }
  0x27   : >> { %310 = shalt.err (!%p307_p12)  }
  0x28   : >> { %s311_s18 = sshra.s32 %s78_s30, 4  ;;  %s400_s28 = smov [#allocation2]   ;;  %s312_s18 = int_to_ptr.vmem [resolvable:$true] %s311_s18 }
  0x29   : >> { %s313_s27 = scalar_lea.vmem %s312_s18, 1  ;;  %s315_s29 = scalar_lea.vmem %s400_s28, 8 }
  0x2a   : >> { %p314_p13 = scmp.ne.s32.totalorder %s312_s18, %s313_s27  ;;  %p316_p0 = scmp.lt.s32.totalorder %s312_s18, [#allocation2] }
  0x2b   : >> { %p317_p1 = scmp.lt.s32.totalorder %s315_s29, %s313_s27 }
  0x2d   : >> { %p318_p2 = por %p317_p1, %p316_p0 }
  0x2f   : >> { %p319_p3 = pnand %p318_p2, %p314_p13 }
  0x31   : >> { %322 = shalt.err (!%p319_p3)  }
  0x32   : >> { %80 = dma.hbm_to_vmem [thread:$0]  %s76_s6, 16, %s78_s30, %s67_s7 }
  0x33   : >> { %s62_s26 = sadd.s32 1, %s393_s26  }
  0x34   : >> { %p59_p5 = scmp.ge.s32.totalorder %s62_s26, 8  }
  0x35   : > { %s395_s3 = smov (%p59_p5), 0  }
  0x36   : > { %61 = sbr.rel (!%p59_p5) target bundleno = 22 (0x16), region = 73 }
  0x3b LB: >> { %s87_s4 = scalar_lea.sflag [#allocation3], %s397_s3  ;;  %s397_s3 = sphi %s395_s3, %s86_s3  }
  0x3c   : >> { %373 = dma.done.wait %s87_s4, 16 }
  0x3d   : >> { %374 = vsyncadd %s87_s4, 4294967280  ;;  %s86_s3 = sadd.s32 1, %s397_s3  }
  0x3e   : >> { %p83_p7 = scmp.ge.s32.totalorder %s86_s3, 8  }
  0x3f   : > { %v91_v0 = vld [vmem:[#allocation2] sm:$0xff] (%p83_p7)  ;;  %s105_s26 = scalar_lea.hbm (%p83_p7), %s525_s2, %s226_s23  ;;  %s107_s6 = sshll.u32 (%p83_p7), %s55_s25, 4  ;;  %s108_s6 = int_to_ptr.vmem [resolvable:$true] %s107_s6 }
  0x40   : > { %85 = sbr.rel (!%p83_p7) target bundleno = 59 (0x3b), region = 84  ;;  %v92_v1 = vmul.f32 (%p83_p7), 11.313708, %v91_v0  ;;  %s109_s7 = sshll.u32 (%p83_p7), %s105_s26, 4  ;;  %s110_s7 = int_to_ptr.hbm [resolvable:$true] %s109_s7 }
  0x41   : > { %s95_s8 = scalar_lea.sflag (%p83_p7), [#allocation7], %s53_s22  ;;  %s337_s9 = sshra.s32 (%p83_p7), %s110_s7, 4  ;;  %s338_s9 = int_to_ptr.hbm [resolvable:$true] %s337_s9 }
  0x42   : > { %93 = vst [vmem:[%s55_s25] sm:$0xff] (%p83_p7), %v92_v1  ;;  %s339_s10 = scalar_lea.hbm (%p83_p7), %s338_s9, 8  ;;  %s343_s23 = scalar_lea.hbm (%p83_p7), %s525_s2, 16 }
  0x43   : > { %p340_p8 = scmp.ne.s32.totalorder (%p83_p7), %s338_s9, %s339_s10  ;;  %p344_p11 = scmp.lt.s32.totalorder (%p83_p7), %s338_s9, %s525_s2 }
  0x44   : > { %p345_p12 = scmp.lt.s32.totalorder (%p83_p7), %s343_s23, %s339_s10 }
  0x45   : > { %p341_p9 = pnand %p340_p8, %p447_p4 }
  0x46   : > { %p346_p13 = por %p345_p12, %p344_p11 }
  0x47   : > { %p342_p10 = pneg %p341_p9 }
  0x49   : > { %p347_p0 = pnand %p346_p13, %p342_p10 }
  0x4b   : > { %350 = shalt.err (!%p347_p0)
}
  0x4c   : > { %239 = dma.vmem_to_hbm [thread:$0]  (%p447_p4), %s108_s6, 128, %s110_s7, %s95_s8  }
  0x4d PF: > { %p245_p1 = scmp.ge.s32.totalorder %s389_s15, 1  ;;  %s121_s22 = sand.u32 1, %s381_s13  }
  0x4e   : > { %s122_s24 = scalar_lea.sflag [#allocation7], %s121_s22 }
  0x4f   : > { %p242_p2 = pnand %p245_p1, %p451_p6 }
  0x51   : > { %p243_p3 = pneg %p242_p2 }
  0x53   : > { %376 = dma.done.wait (%p243_p3), %s122_s24, 128  }
  0x54   : > { %378 = vsyncadd (%p243_p3), %s122_s24, 4294967168  ;;  %p20_p5 = scmp.ge.s32.totalorder %s436_s16, 3   ;;  %s528_s13 = smov %s385_s14 }
  0x55   : > { %s529_s14 = smov %s445_s19  ;;  %s530_s15 = smov %s436_s16 }
  0x56   :  { %22 = sbr.rel (!%p20_p5) target bundleno = 9 (0x9), region = 95 }
  0x5b   :  { %128 = vsyncpa [#allocation7], 1 }
  0x5c   :  { %130 = vsyncpa [#allocation7 + $0x1], 1 }
  0x5d   :  { %131 = vsyncmov [#allocation3] }
  0x60   :  { %s132_s15 = vpop.sfrf %131 }
  0x61   :  { %p231_p4 = scmp.ne.s32.totalorder %s132_s15, 0 }
  0x63   :  { %136 = shalt.err (%p231_p4)  }
  0x64   :  { %138 = vsyncmov [#allocation3 + $0x1] }
  0x67   :  { %s139_s20 = vpop.sfrf %138 }
  0x68   :  { %p232_p6 = scmp.ne.s32.totalorder %s139_s20, 0 }
  0x6a   :  { %143 = shalt.err (%p232_p6)  }
  0x6b   :  { %145 = vsyncmov [#allocation3 + $0x2] }
  0x6e   :  { %s146_s21 = vpop.sfrf %145 }
  0x6f   :  { %p233_p7 = scmp.ne.s32.totalorder %s146_s21, 0 }
  0x71   :  { %150 = shalt.err (%p233_p7)  }
  0x72   :  { %152 = vsyncmov [#allocation3 + $0x3] }
  0x75   :  { %s153_s25 = vpop.sfrf %152 }
  0x76   :  { %p234_p8 = scmp.ne.s32.totalorder %s153_s25, 0 }
  0x78   :  { %157 = shalt.err (%p234_p8)  }
  0x79   :  { %159 = vsyncmov [#allocation3 + $0x4] }
  0x7c   :  { %s160_s16 = vpop.sfrf %159 }
  0x7d   :  { %p235_p9 = scmp.ne.s32.totalorder %s160_s16, 0 }
  0x7f   :  { %164 = shalt.err (%p235_p9)  }
  0x80   :  { %166 = vsyncmov [#allocation3 + $0x5] }
  0x83   :  { %s167_s1 = vpop.sfrf %166 }
  0x84   :  { %p236_p10 = scmp.ne.s32.totalorder %s167_s1, 0 }
  0x86   :  { %171 = shalt.err (%p236_p10)  }
  0x87   :  { %173 = vsyncmov [#allocation3 + $0x6] }
  0x8a   :  { %s174_s2 = vpop.sfrf %173 }
  0x8b   :  { %p237_p11 = scmp.ne.s32.totalorder %s174_s2, 0 }
  0x8d   :  { %178 = shalt.err (%p237_p11)  }
  0x8e   :  { %180 = vsyncmov [#allocation3 + $0x7] }
  0x91   :  { %s181_s13 = vpop.sfrf %180 }
  0x92   :  { %p238_p12 = scmp.ne.s32.totalorder %s181_s13, 0 }
  0x94   :  { %185 = shalt.err (%p238_p12)  }

</bundles_post_ra>
